<compile_context>
chip_gen: v7x
topology: tpu7x:2x2x1
jax: 0.10.0
libtpu: 0.0.40
codegen_flags: <defaults>
</compile_context>

<pallas_src>
import functools
import math

import jax
import jax.numpy as jnp
from jax.experimental import pallas as pl
from jax.experimental.pallas import tpu as pltpu


# ---------------------------------------------------------------------------
# Hardware-aware sizing.
# ---------------------------------------------------------------------------
def _detect_vmem_capacity_bytes():
    try:
        info = pltpu.get_tpu_info()
        for name in ("vmem_capacity_bytes", "vmem_bytes", "vmem_size_bytes"):
            v = getattr(info, name, None)
            if v is not None:
                v = int(v)
                if v > 0:
                    return v
    except Exception:
        pass
    try:
        kind = jax.devices()[0].device_kind.lower()
        if "v7" in kind or "7x" in kind:
            return 64 * 1024 * 1024
        if any(t in kind for t in ("v4", "v5", "v6")):
            return 128 * 1024 * 1024
    except Exception:
        pass
    return 64 * 1024 * 1024          # conservative: assume smallest (v7x-class) VMEM


_VMEM_CAPACITY = _detect_vmem_capacity_bytes()
if _VMEM_CAPACITY >= 100 * 1024 * 1024:          # v5e / v6e class (128 MiB VMEM)
    _TARGET_BLOCK_BYTES = 8 * 1024 * 1024
    _VMEM_LIMIT_BYTES = 96 * 1024 * 1024
else:                                            # v7x class (64 MiB per TC) / unknown
    _TARGET_BLOCK_BYTES = 3 * 1024 * 1024
    _VMEM_LIMIT_BYTES = 48 * 1024 * 1024

# The packed channels_last kernel carries ~4-5 block-sized f32 temps, so cap
# its HBM tile separately (still large enough to amortize per-step overhead).
_PACKED_TARGET_BLOCK_BYTES = min(_TARGET_BLOCK_BYTES, 4 * 1024 * 1024)
_MAX_PACKED_LANES = 512              # cap on k*C (bounds the selector matrix)


def _round_up(x, m):
    return ((x + m - 1) // m) * m


def _sublane_unit(itemsize):
    # Keep the second-minor block dim a multiple of the native sublane tiling:
    # 8 for 32-bit, 16 for bf16, 32 for 8-bit dtypes (32 covers all sub-32-bit).
    return 8 if itemsize >= 4 else 32


def _row_block(rows, lanes, itemsize, target):
    unit = _sublane_unit(itemsize)
    br = max(unit, (target // max(1, lanes * itemsize)) // unit * unit)
    return min(br, _round_up(rows, unit))


# ---------------------------------------------------------------------------
# channels_last, plain kernel: rows on sublanes, C on lanes, reduce over lanes.
# ---------------------------------------------------------------------------
def _ln_rows_kernel(x_ref, w_ref, b_ref, o_ref, *, eps):
    x = x_ref[...].astype(jnp.float32)                       # (br, C)
    mean = jnp.mean(x, axis=-1, keepdims=True)
    xc = x - mean
    var = jnp.mean(xc * xc, axis=-1, keepdims=True)          # biased var (torch)
    inv = jax.lax.rsqrt(var + eps)
    w = w_ref[...].astype(jnp.float32)                       # (1, C)
    b = b_ref[...].astype(jnp.float32)
    o_ref[...] = (xc * inv * w + b).astype(o_ref.dtype)


def _layernorm_rows(x2, weight, bias, eps):
    R, C = x2.shape
    br = _row_block(R, C, x2.dtype.itemsize, _TARGET_BLOCK_BYTES)
    w2 = weight.reshape(1, C)
    b2 = bias.reshape(1, C)
    return pl.pallas_call(
        functools.partial(_ln_rows_kernel, eps=eps),
        out_shape=jax.ShapeDtypeStruct((R, C), x2.dtype),
        grid_spec=pltpu.PrefetchScalarGridSpec(
            num_scalar_prefetch=0,
            grid=(pl.cdiv(R, br),),                          # ragged last block OK
            in_specs=[
                pl.BlockSpec((br, C), lambda i: (i, 0)),
                pl.BlockSpec((1, C), lambda i: (0, 0)),
                pl.BlockSpec((1, C), lambda i: (0, 0)),
            ],
            out_specs=pl.BlockSpec((br, C), lambda i: (i, 0)),
        ),
        compiler_params=pltpu.CompilerParams(
            dimension_semantics=("parallel",),
            vmem_limit_bytes=_VMEM_LIMIT_BYTES),
    )(x2, w2, b2)


# ---------------------------------------------------------------------------
# channels_last, lane-packed kernel: k rows share one k*C-lane row (k*C % 128
# == 0), so DMA and stores are fully lane-dense.  Per-group stats come from a
# 0/1 block-diagonal matmul on the idle MXU.
# ---------------------------------------------------------------------------
def _group_mean(v, sel_bf16, inv_count, exact):
    """Per-group lane mean of v, broadcast back across each group's lanes.

    With exact=True, v is split into bf16 hi+lo pieces: products against the
    exact 0/1 selector are exact and accumulation is f32, so the result is
    ~f32-accurate even if the MXU consumes bf16 operands.
    """
    if exact:
        hi = v.astype(jnp.bfloat16)
        lo = (v - hi.astype(jnp.float32)).astype(jnp.bfloat16)
        s = jnp.dot(hi, sel_bf16, preferred_element_type=jnp.float32)
        s = s + jnp.dot(lo, sel_bf16, preferred_element_type=jnp.float32)
    else:
        s = jnp.dot(v.astype(jnp.bfloat16), sel_bf16,
                    preferred_element_type=jnp.float32)
    return s * inv_count


def _ln_rows_packed_kernel(x_ref, w_ref, b_ref, o_ref, *, eps, C, k, exact):
    kC = k * C
    x = x_ref[...].astype(jnp.float32)                       # (br, kC) lane-dense
    # Block-diagonal 0/1 selector (group g = lanes [g*C, (g+1)*C)); built from
    # iota so it costs no HBM traffic (VPU slack under the HBM roofline).
    gi = jax.lax.broadcasted_iota(jnp.int32, (kC, kC), 0) // C
    gj = jax.lax.broadcasted_iota(jnp.int32, (kC, kC), 1) // C
    sel = jnp.where(gi == gj, 1.0, 0.0).astype(jnp.bfloat16)  # 0/1 exact in bf16
    inv_count = jnp.float32(1.0 / C)

    mean = _group_mean(x, sel, inv_count, exact)              # group mean per lane
    xc = x - mean
    var = _group_mean(xc * xc, sel, inv_count, exact)         # biased group variance
    inv = jax.lax.rsqrt(var + eps)

    w = w_ref[...].astype(jnp.float32)                        # (1, kC): weight tiled k times
    b = b_ref[...].astype(jnp.float32)
    o_ref[...] = (xc * inv * w + b).astype(o_ref.dtype)


def _layernorm_rows_packed(x2, weight, bias, eps, k):
    R, C = x2.shape
    kC = k * C
    Rp = R // k
    xp = x2.reshape(Rp, kC)                                   # free row-major view
    wp = jnp.tile(weight, k).reshape(1, kC)
    bp = jnp.tile(bias, k).reshape(1, kC)
    br = _row_block(Rp, kC, x2.dtype.itemsize, _PACKED_TARGET_BLOCK_BYTES)
    exact = x2.dtype.itemsize > 2          # hi/lo compensation only for >=32-bit inputs
    yp = pl.pallas_call(
        functools.partial(_ln_rows_packed_kernel, eps=eps, C=C, k=k, exact=exact),
        out_shape=jax.ShapeDtypeStruct((Rp, kC), x2.dtype),
        grid_spec=pltpu.PrefetchScalarGridSpec(
            num_scalar_prefetch=0,
            grid=(pl.cdiv(Rp, br),),
            in_specs=[
                pl.BlockSpec((br, kC), lambda i: (i, 0)),
                pl.BlockSpec((1, kC), lambda i: (0, 0)),
                pl.BlockSpec((1, kC), lambda i: (0, 0)),
            ],
            out_specs=pl.BlockSpec((br, kC), lambda i: (i, 0)),
        ),
        compiler_params=pltpu.CompilerParams(
            dimension_semantics=("parallel",),
            vmem_limit_bytes=_VMEM_LIMIT_BYTES),
    )(xp, wp, bp)
    return yp.reshape(R, C)


# ---------------------------------------------------------------------------
# channels_first kernel: C on sublanes, spatial (H*W) on lanes, reduce over C.
# No transposes anywhere -- input stays in NCHW order.
# ---------------------------------------------------------------------------
def _ln_cf_kernel(x_ref, w_ref, b_ref, o_ref, *, eps):
    x = x_ref[...].astype(jnp.float32)                       # (bn, C, t_hw); C un-tiled
    mean = jnp.mean(x, axis=1, keepdims=True)
    xc = x - mean
    var = jnp.mean(xc * xc, axis=1, keepdims=True)
    inv = jax.lax.rsqrt(var + eps)
    w = w_ref[...].astype(jnp.float32)                       # (1, C, 1)
    b = b_ref[...].astype(jnp.float32)
    o_ref[...] = (xc * inv * w + b).astype(o_ref.dtype)


def _cf_tiles(N, C, HW, itemsize):
    col_bytes = C * itemsize                                 # one spatial column
    max_hw = max(128, _TARGET_BLOCK_BYTES // col_bytes)
    if HW <= max_hw:
        t_hw = HW                                            # full dim: no 128 rule
    else:
        cand = max(128, (max_hw // 128) * 128)
        t_hw = cand
        # Prefer a 128-multiple that divides HW (uniform, fully lane-dense
        # tiles, no ragged tail) while keeping >= half the target tile size.
        t = cand
        while t >= max(128, cand // 2):
            if HW % t == 0:
                t_hw = t
                break
            t -= 128
    bn = max(1, min(N, _TARGET_BLOCK_BYTES // max(1, t_hw * col_bytes)))
    # HW-tile axis is outermost; make sure v7x's two TensorCores both get work
    # for small-batch inputs by splitting HW when the grid would be a single step.
    if pl.cdiv(N, bn) * pl.cdiv(HW, t_hw) < 2 and HW >= 256:
        t_hw = _round_up(pl.cdiv(HW, 2), 128)
    return bn, t_hw


def _layernorm_channels_first(x3, weight, bias, eps):
    """x3: (N, C, HW); normalize over axis 1."""
    N, C, HW = x3.shape
    bn, t_hw = _cf_tiles(N, C, HW, x3.dtype.itemsize)
    wc = weight.reshape(1, C, 1)
    bc = bias.reshape(1, C, 1)
    return pl.pallas_call(
        functools.partial(_ln_cf_kernel, eps=eps),
        out_shape=jax.ShapeDtypeStruct((N, C, HW), x3.dtype),
        grid_spec=pltpu.PrefetchScalarGridSpec(
            num_scalar_prefetch=0,
            # HW-tiles outermost: both v7x TCs get tiles even when N == 1.
            grid=(pl.cdiv(HW, t_hw), pl.cdiv(N, bn)),
            in_specs=[
                pl.BlockSpec((bn, C, t_hw), lambda j, n: (n, 0, j)),
                pl.BlockSpec((1, C, 1), lambda j, n: (0, 0, 0)),
                pl.BlockSpec((1, C, 1), lambda j, n: (0, 0, 0)),
            ],
            out_specs=pl.BlockSpec((bn, C, t_hw), lambda j, n: (n, 0, j)),
        ),
        compiler_params=pltpu.CompilerParams(
            dimension_semantics=("parallel", "parallel"),
            vmem_limit_bytes=_VMEM_LIMIT_BYTES),
    )(x3, wc, bc)


# ---------------------------------------------------------------------------
# Public wrapper: Pallas equivalent of ParC_convnext.LayerNorm.forward.
# ---------------------------------------------------------------------------
def layer_norm(x, weight, bias, eps=1e-6, data_format="channels_last"):
    if data_format not in ("channels_last", "channels_first"):
        raise NotImplementedError

    if data_format == "channels_last":
        C = x.shape[-1]
        lead = x.shape[:-1]
        R = math.prod(lead) if lead else 1
        x2 = x.reshape(-1, C)                                # free view
        k = 128 // math.gcd(C, 128)                          # lcm(C,128) // C
        if k > 1 and k * C <= _MAX_PACKED_LANES and R % k == 0:
            y2 = _layernorm_rows_packed(x2, weight, bias, eps, k)
        else:
            # TODO(synk): if ragged-R channels_last shapes ever dominate, pack
            # the k-divisible row prefix and run the tail on the plain path.
            y2 = _layernorm_rows(x2, weight, bias, eps)
        return y2.reshape(*lead, C)
    else:
        # channels_first: (N, C, *spatial); normalize over C, keep NCHW layout.
        N, C = x.shape[0], x.shape[1]
        hw = math.prod(x.shape[2:]) if len(x.shape) > 2 else 1
        x3 = x.reshape(N, C, hw)                             # free view, no transpose
        y3 = _layernorm_channels_first(x3, weight, bias, eps)
        return y3.reshape(x.shape)


# ---------------------------------------------------------------------------
# Pure-JAX references (mirror the PyTorch module).
# ---------------------------------------------------------------------------
def _ref_channels_first(x, weight, bias, eps):
    u = jnp.mean(x, axis=1, keepdims=True)
    s = jnp.mean((x - u) ** 2, axis=1, keepdims=True)
    xn = (x - u) / jnp.sqrt(s + eps)
    return weight[None, :, None, None] * xn + bias[None, :, None, None]


def _ref_channels_last(x, weight, bias, eps):
    u = jnp.mean(x, axis=-1, keepdims=True)
    s = jnp.mean((x - u) ** 2, axis=-1, keepdims=True)
    xn = (x - u) / jnp.sqrt(s + eps)
    return xn * weight + bias


if __name__ == "__main__":
    eps = 1e-6

    # ---- channels_first: NCHW (ParC-ConvNeXt stem / downsample usage) ----
    C = 32
    k1, k2, k3 = jax.random.split(jax.random.PRNGKey(0), 3)
    w_cf = 1.0 + 0.1 * jax.random.normal(k1, (C,), jnp.float32)
    b_cf = 0.05 * jax.random.normal(k2, (C,), jnp.float32)
    x_cf = jax.random.normal(k3, (2, C, 16, 16), jnp.float32)
    y_cf = jax.block_until_ready(
        layer_norm(x_cf, w_cf, b_cf, eps=eps, data_format="channels_first"))
    ref_cf = _ref_channels_first(x_cf, w_cf, b_cf, eps)
    assert y_cf.shape == x_cf.shape and y_cf.dtype == x_cf.dtype
    assert jnp.allclose(y_cf, ref_cf, atol=1e-4, rtol=1e-4)

    # ---- channels_last, lane-packed path (ConvNeXt C=96; R=512, k=4) ----
    C = 96
    k4, k5, k6 = jax.random.split(jax.random.PRNGKey(1), 3)
    w_cl = 1.0 + 0.1 * jax.random.normal(k4, (C,), jnp.float32)
    b_cl = 0.05 * jax.random.normal(k5, (C,), jnp.float32)
    x_cl = jax.random.normal(k6, (2, 16, 16, C), jnp.float32)
    y_cl = jax.block_until_ready(
        layer_norm(x_cl, w_cl, b_cl, eps=eps, data_format="channels_last"))
    ref_cl = _ref_channels_last(x_cl, w_cl, b_cl, eps)
    assert y_cl.shape == x_cl.shape and y_cl.dtype == x_cl.dtype
    assert jnp.allclose(y_cl, ref_cl, atol=1e-4, rtol=1e-4)

    # Same shape in bf16 (exercises the single-pass stats matmul branch).
    x_bf = x_cl.astype(jnp.bfloat16)
    y_bf = jax.block_until_ready(
        layer_norm(x_bf, w_cl, b_cl, eps=eps, data_format="channels_last"))
    assert y_bf.shape == x_bf.shape and y_bf.dtype == jnp.bfloat16
    assert jnp.allclose(y_bf.astype(jnp.float32), ref_cl, atol=6e-2, rtol=6e-2)

    # ---- channels_last, fallback path (R=105 not divisible by k=8, C=48) ----
    C2 = 48
    w2 = jnp.linspace(0.5, 1.5, C2).astype(jnp.float32)
    b2 = jnp.linspace(-0.2, 0.2, C2).astype(jnp.float32)
    x_rg = jax.random.normal(jax.random.PRNGKey(2), (3, 5, 7, C2), jnp.float32)
    y_rg = jax.block_until_ready(
        layer_norm(x_rg, w2, b2, eps=eps, data_format="channels_last"))
    ref_rg = _ref_channels_last(x_rg, w2, b2, eps)
    assert y_rg.shape == x_rg.shape and y_rg.dtype == x_rg.dtype
    assert jnp.allclose(y_rg, ref_rg, atol=1e-4, rtol=1e-4)

    print("KERNEL_OK")
</pallas_src>

<mosaic_0001>
module attributes {stable_mosaic.version = 11 : i64} {
  func.func @_ln_cf_kernel(%arg0: i32, %arg1: i32, %arg2: memref<2x32x128xf32, #tpu.memory_space<vmem>>, %arg3: memref<1x32x1xf32, #tpu.memory_space<vmem>>, %arg4: memref<1x32x1xf32, #tpu.memory_space<vmem>>, %arg5: memref<2x32x128xf32, #tpu.memory_space<vmem>>) attributes {dimension_semantics = [#tpu.dimension_semantics<parallel>, #tpu.dimension_semantics<parallel>], iteration_bounds = array<i64: 2, 1>, scalar_prefetch = 0 : i64, scratch_operands = 0 : i64, tpu.core_type = #tpu.core_type<tc>, window_params = [{transform_indices = @transform_0, window_bounds = array<i64: 2, 32, 128>}, {pipeline_mode = #tpu.pipeline_mode<synchronous>, transform_indices = @transform_1, window_bounds = array<i64: 1, 32, 1>}, {pipeline_mode = #tpu.pipeline_mode<synchronous>, transform_indices = @transform_2, window_bounds = array<i64: 1, 32, 1>}, {transform_indices = @transform_3, window_bounds = array<i64: 2, 32, 128>}]} {
    %c0 = arith.constant 0 : index
    %c0_0 = arith.constant 0 : index
    %c0_1 = arith.constant 0 : index
    %0 = vector.load %arg2[%c0, %c0_0, %c0_1] : memref<2x32x128xf32, #tpu.memory_space<vmem>>, vector<2x32x128xf32>
    %cst = arith.constant dense<0.000000e+00> : vector<2x128xf32>
    %1 = vector.multi_reduction <add>, %0, %cst [1] : vector<2x32x128xf32> to vector<2x128xf32>
    %2 = vector.shape_cast %1 : vector<2x128xf32> to vector<2x1x128xf32>
    %cst_2 = arith.constant 3.200000e+01 : f32
    %3 = vector.broadcast %cst_2 : f32 to vector<2x1x128xf32>
    %4 = arith.divf %2, %3 : vector<2x1x128xf32>
    %5 = vector.broadcast %4 : vector<2x1x128xf32> to vector<2x32x128xf32>
    %6 = arith.subf %0, %5 : vector<2x32x128xf32>
    %7 = arith.mulf %6, %6 : vector<2x32x128xf32>
    %cst_3 = arith.constant dense<0.000000e+00> : vector<2x128xf32>
    %8 = vector.multi_reduction <add>, %7, %cst_3 [1] : vector<2x32x128xf32> to vector<2x128xf32>
    %9 = vector.shape_cast %8 : vector<2x128xf32> to vector<2x1x128xf32>
    %cst_4 = arith.constant 3.200000e+01 : f32
    %10 = vector.broadcast %cst_4 : f32 to vector<2x1x128xf32>
    %11 = arith.divf %9, %10 : vector<2x1x128xf32>
    %cst_5 = arith.constant 9.99999997E-7 : f32
    %12 = vector.broadcast %cst_5 : f32 to vector<2x1x128xf32>
    %13 = arith.addf %11, %12 : vector<2x1x128xf32>
    %14 = math.rsqrt %13 : vector<2x1x128xf32>
    %c0_6 = arith.constant 0 : index
    %c0_7 = arith.constant 0 : index
    %c0_8 = arith.constant 0 : index
    %15 = vector.load %arg3[%c0_6, %c0_7, %c0_8] : memref<1x32x1xf32, #tpu.memory_space<vmem>>, vector<1x32x1xf32>
    %c0_9 = arith.constant 0 : index
    %c0_10 = arith.constant 0 : index
    %c0_11 = arith.constant 0 : index
    %16 = vector.load %arg4[%c0_9, %c0_10, %c0_11] : memref<1x32x1xf32, #tpu.memory_space<vmem>>, vector<1x32x1xf32>
    %17 = vector.broadcast %14 : vector<2x1x128xf32> to vector<2x32x128xf32>
    %18 = arith.mulf %6, %17 : vector<2x32x128xf32>
    %19 = vector.broadcast %15 : vector<1x32x1xf32> to vector<2x32x128xf32>
    %20 = arith.mulf %18, %19 : vector<2x32x128xf32>
    %21 = vector.broadcast %16 : vector<1x32x1xf32> to vector<2x32x128xf32>
    %22 = arith.addf %20, %21 : vector<2x32x128xf32>
    %c0_12 = arith.constant 0 : index
    %c0_13 = arith.constant 0 : index
    %c0_14 = arith.constant 0 : index
    %23 = vector.load %arg5[%c0_12, %c0_13, %c0_14] : memref<2x32x128xf32, #tpu.memory_space<vmem>>, vector<2x32x128xf32>
    tpu.vector_store %arg5[%c0_12, %c0_13, %c0_14], %22 {strides = array<i32>} : memref<2x32x128xf32, #tpu.memory_space<vmem>>, vector<2x32x128xf32>,
    return
  }
  func.func @transform_0(%arg0: i32, %arg1: i32) -> (i32, i32, i32) {
    %c0_i32 = arith.constant 0 : i32
    %c0_i32_0 = arith.constant 0 : i32
    return %arg1, %c0_i32, %arg0 : i32, i32, i32
  }
  func.func @transform_1(%arg0: i32, %arg1: i32) -> (i32, i32, i32) {
    %c0_i32 = arith.constant 0 : i32
    %c0_i32_0 = arith.constant 0 : i32
    %c0_i32_1 = arith.constant 0 : i32
    %c0_i32_2 = arith.constant 0 : i32
    return %c0_i32, %c0_i32_0, %c0_i32_1 : i32, i32, i32
  }
  func.func @transform_2(%arg0: i32, %arg1: i32) -> (i32, i32, i32) {
    %c0_i32 = arith.constant 0 : i32
    %c0_i32_0 = arith.constant 0 : i32
    %c0_i32_1 = arith.constant 0 : i32
    %c0_i32_2 = arith.constant 0 : i32
    return %c0_i32, %c0_i32_0, %c0_i32_1 : i32, i32, i32
  }
  func.func @transform_3(%arg0: i32, %arg1: i32) -> (i32, i32, i32) {
    %c0_i32 = arith.constant 0 : i32
    %c0_i32_0 = arith.constant 0 : i32
    return %arg1, %c0_i32, %arg0 : i32, i32, i32
  }
}

</mosaic_0001>

<bundles_post_ra>
// kernel: tpu_custom_call.1
= control target key start
LH: loop header
LB: loop body
LE: loop exit
PB: predicated region body
PF: predicated region fallthrough
CT: control target
= control target key end

     0   :  { %8 = vsyncpa [#allocation3], 0  ;;  %s901_s0 = inlined_call_operand.hbm [shape: f32[2,32,256], index: 0, kind: input, shape index: {}]   ;;  %s902_s1 = inlined_call_operand.vmem [shape: f32[1,32,1], index: 1, kind: input, shape index: {}]   ;;  %s903_s2 = inlined_call_operand.vmem [shape: f32[1,32,1], index: 2, kind: input, shape index: {}]   ;;  %s904_s3 = inlined_call_operand.hbm [shape: f32[2,32,256], index: 3, kind: output, shape index: {}]  }
   0x1   :  { %10 = vsyncpa [#allocation3 + $0x1], 0 }
   0x2   :  { %11 = vsyncpa [#allocation4], 0 }
   0x3   :  { %13 = vsyncpa [#allocation4 + $0x1], 0  ;;  %s690_s12 = smov 0   ;;  %s692_s13 = smov 0  }
   0x4   :  { %s694_s14 = smov 0   ;;  %s696_s15 = smov 0  }
   0x5   :  { %s698_s16 = smov 0   ;;  %s700_s17 = smov 0  }
   0x6 LB: > { %s459_s18 = sadd.s32 4294967295, %s659_s17   ;;  %s460_s19 = sadd.s32 4294967294, %s659_s17   ;;  %s659_s17 = sphi %s700_s17, %s19_s17   ;;  %s655_s16 = sphi %s698_s16, %s918_s16   ;;  %s651_s15 = sphi %s696_s15, %s917_s15   ;;  %s647_s14 = sphi %s694_s14, %s916_s14   ;;  %s643_s13 = sphi %s692_s13, %s915_s13   ;;  %s639_s12 = sphi %s690_s12, %s914_s12  }
   0x7   : > { %s31_s20 = sadd.s32 1, %s655_s16  ;;  %s40_s21 = sadd.s32 1, %s647_s14 }
   0x8   : > { %p33_p0 = scmp.ge.s32.totalorder %s31_s20, 2  ;;  %p47_p1 = scmp.ne.s32.totalorder %s647_s14, %s643_s13 }
   0x9   : > { %p48_p2 = scmp.eq.s32.totalorder %s659_s17, 0  ;;  %p53_p3 = scmp.ne.s32.totalorder %s643_s13, %s639_s12 }
   0xa   : > { %s920_s20 = smov (%p33_p0, %s31_s20), 0  ;;  %p54_p5 = scmp.eq.s32.totalorder %s459_s18, 0 }
   0xb   : > { %p731_p4 = por %p48_p2, %p47_p1  ;;  %s36_s23 = ssub.s32 %s655_s16, %s920_s20 }
   0xc   : > { %p121_p6 = scmp.eq.s32.totalorder %s459_s18, 1  ;;  %p38_p7 = scmp.eq.s32.totalorder %s36_s23, 0 }
   0xd   : > { %p737_p8 = por %p54_p5, %p53_p3  ;;  %p127_p10 = scmp.eq.s32.totalorder %s460_s19, 1 }
   0xe   : > { %p741_p9 = por %p121_p6, %p47_p1  ;;  %p484_p13 = scmp.lt.s32.totalorder %s659_s17, 2 }
   0xf   : > { %s746_s26 = scalar_select %p38_p7, %s647_s14, %s40_s21  }
  0x10   : > { %s908_s25 = scalar_select %p741_p9, 1, 0 }
  0x11   : > { %p748_p11 = por %p127_p10, %p53_p3  ;;  %s153_s28 = sand.u32 1, %s647_s14  }
  0x12   : > { %s463_s29 = sshll.u32 %s153_s28, 6  ;;  %s464_s30 = sshll.u32 %s655_s16, 7 }
  0x13   : > { %s909_s27 = scalar_select %p748_p11, 1, 0 }
  0x14   : > { %s759_s6 = scalar_lea.hbm %s901_s0, %s464_s30  ;;  %s157_s7 = scalar_lea.vmem [#allocation2], %s463_s29 }
  0x15   : > { %s166_s8 = sshll.u32 %s157_s7, 4  ;;  %p765_p0 = pnand %p484_p13, %p731_p4  ;;  %s761_s8 = int_to_ptr.vmem [resolvable:$true] %s166_s8 }
  0x16   : > { %s769_s10 = scalar_lea.sflag [#allocation3], %s153_s28  ;;  %s547_s11 = scalar_lea.hbm %s759_s6, 1024 }
  0x17   : > { %p548_p1 = scmp.ne.s32.totalorder %s759_s6, %s547_s11  ;;  %p549_p2 = pneg %p765_p0 }
  0x18   : > { %s552_s21 = scalar_lea.hbm %s901_s0, 2048  ;;  %p553_p4 = scmp.lt.u32.totalorder %s759_s6, %s901_s0 }
  0x19   : > { %p550_p3 = pnand %p549_p2, %p548_p1  ;;  %p554_p6 = scmp.lt.u32.totalorder %s552_s21, %s547_s11 }
  0x1a   : > { %p556_p10 = scmp.lt.u32.totalorder %s547_s11, %s759_s6 }
  0x1b   : > { %p551_p5 = pneg %p550_p3  ;;  %p555_p7 = por %p554_p6, %p553_p4 }
  0x1d   : > { %p557_p13 = por %p556_p10, %p555_p7 }
  0x1f   : > { %p558_p12 = pnand %p557_p13, %p551_p5 }
  0x21   : > { %561 = shalt.err (!%p558_p12)
}
  0x22   : > { %s562_s28 = scalar_lea.vmem %s761_s8, 1024  ;;  %s661_s29 = smov [#allocation2]  }
  0x23   : > { %p563_p1 = scmp.ne.s32.totalorder %s761_s8, %s562_s28  ;;  %s567_s30 = sshll.u32 %s661_s29, 4  ;;  %s568_s30 = int_to_ptr.vmem [resolvable:$false] %s567_s30 }
  0x24   : > { %s569_s4 = scalar_lea.vmem %s568_s30, 2048  ;;  %p570_p9 = scmp.lt.s32.totalorder %s761_s8, %s568_s30 }
  0x25   : > { %p565_p3 = pnand %p563_p1, %p549_p2  ;;  %p571_p4 = scmp.lt.s32.totalorder %s569_s4, %s562_s28 }
  0x27   : > { %p566_p11 = pneg %p565_p3  ;;  %p572_p6 = por %p571_p4, %p570_p9 }
  0x29   : > { %p573_p7 = pnand %p572_p6, %p566_p11 }
  0x2b   : > { %576 = shalt.err (!%p573_p7)
}
  0x2c   : > { %s662_s5 = smov 256   ;;  %s663_s7 = smov 128  }
  0x2d   : > { %s664_s11 = smov 8   ;;  %p465_p12 = scmp.ge.s32.totalorder %s659_s17, 1 }
  0x2e   : > { %479 = dma.hbm_to_vmem [thread:$0]  (!%p765_p0), %s759_s6, 1024, %s761_s8, %s769_s10, %s662_s5, %s663_s7, %s664_s11  }
  0x2f   : > { %p174_p2 = scmp.lt.s32.totalorder %s659_s17, 3 }
  0x31   : > { %p175_p5 = pnand %p465_p12, %p174_p2 }
  0x32   : > { %s800_s18 = sand.u32 (!%p175_p5), 1, %s643_s13  }
  0x33   : > { %178 = sbr.rel (%p175_p5) target bundleno = 220 (0xdc), region = 32  ;;  %s466_s19 = sshll.u32 (!%p175_p5), %s800_s18, 6 }
  0x34   : > { %s181_s21 = scalar_lea.sflag (!%p175_p5), [#allocation3], %s800_s18  ;;  %s806_s22 = scalar_lea.vmem (!%p175_p5), [#allocation2], %s466_s19 }
  0x3a   : > { %630 = dma.done.wait (%p737_p8), %s181_s21, 1024  }
  0x3b   : > { %632 = vsyncadd (%p737_p8), %s181_s21, 4294966272  ;;  %v665_v0 = vmov 0   ;;  %v280_v1 = vld [vmem:[%s902_s1 + $0x10] sm:$0xff]  ;;  %v278_v2 = vld [vmem:[%s902_s1] sm:$0xff]  ;;  %s469_s10 = sshll.u32 %s651_s15, 7  ;;  %s359_s28 = scalar_lea.sflag [#allocation4], %s800_s18 }
  0x3c   : > { %542 = vset.pattern.permute.xlu1 %v665_v0  ;;  %541 = vset.pattern.permute.xlu0 %v665_v0  ;;  %v281_v3 = vld [vmem:[%s902_s1 + $0x18] sm:$0xff]  ;;  %v279_v4 = vld [vmem:[%s902_s1 + $0x8] sm:$0xff]  ;;  %v282_v6 = vld [vmem:[%s903_s2] sm:$0xff]  ;;  %s852_s15 = scalar_lea.hbm %s904_s3, %s469_s10  ;;  %p911_p9 = scmp.ne.s32.totalorder %s908_s25, 0 }
  0x3d   : > { %306 = vperm.xlu1 %542, %v280_v1   ;;  %296 = vperm.xlu0 %541, %v278_v2   ;;  %v283_v5 = vld [vmem:[%s903_s2 + $0x8] sm:$0xff]  ;;  %v285_v7 = vld [vmem:[%s903_s2 + $0x18] sm:$0xff]  ;;  %v284_v8 = vld [vmem:[%s903_s2 + $0x10] sm:$0xff]  ;;  %s666_s29 = smov [#allocation5]  }
  0x3e   : > { %v209_v9 = vld [vmem:[%s806_s22] sm:$0xff]  ;;  %v210_v10 = vld [vmem:[%s806_s22 + $0x8] sm:$0xff]  ;;  %v211_v14 = vld [vmem:[%s806_s22 + $0x10] sm:$0xff]  ;;  %s581_s30 = sshll.u32 %s666_s29, 4  ;;  %s582_s30 = int_to_ptr.vmem [resolvable:$false] %s581_s30 }
  0x3f   : > { %v213_v11 = vld [vmem:[%s806_s22 + $0x20] sm:$0xff]  ;;  %v214_v12 = vld [vmem:[%s806_s22 + $0x28] sm:$0xff]  ;;  %v217_v13 = vadd.f32 %v210_v10, %v209_v9  ;;  %v215_v16 = vld [vmem:[%s806_s22 + $0x30] sm:$0xff]  ;;  %s583_s4 = scalar_lea.vmem %s582_s30, 2048 }
  0x40   : > { %v226_v15 = vadd.f32 %v214_v12, %v213_v11  ;;  %v212_v18 = vld [vmem:[%s806_s22 + $0x18] sm:$0xff] }
  0x41   : > { %311 = vperm.xlu1 %542, %v281_v3   ;;  %301 = vperm.xlu0 %541, %v279_v4   ;;  %v218_v17 = vadd.f32 %v217_v13, %v211_v14  ;;  %v216_v20 = vld [vmem:[%s806_s22 + $0x38] sm:$0xff]  ;;  %s206_s22 = scalar_lea.vmem [#allocation5], %s466_s19 }
  0x42   : > { %v227_v19 = vadd.f32 %v226_v15, %v215_v16  ;;  %s374_s9 = sshll.u32 %s206_s22, 4  ;;  %s847_s9 = int_to_ptr.vmem [resolvable:$true] %s374_s9 }
  0x43   : > { %v219_v21 = vadd.f32 %v218_v17, %v212_v18  ;;  %s577_s24 = scalar_lea.vmem %s847_s9, 1024  ;;  %p584_p10 = scmp.lt.s32.totalorder %s847_s9, %s582_s30 }
  0x44   : > { %v228_v22 = vadd.f32 %v227_v19, %v216_v20  ;;  %p578_p8 = scmp.ne.s32.totalorder %s847_s9, %s577_s24  ;;  %p585_p13 = scmp.lt.s32.totalorder %s583_s4, %s577_s24 }
  0x45   : > { %329 = vperm.xlu1 %542, %v283_v5   ;;  %324 = vperm.xlu0 %541, %v282_v6   ;;  %v220_v23 = vrot.slane %v219_v21, 4 }
  0x46   : > { %v229_v24 = vrot.slane %v228_v22, 4  ;;  %p579_p11 = pnand %p578_p8, %p911_p9  ;;  %p586_p1 = por %p585_p13, %p584_p10 }
  0x47   : > { %v221_v25 = vadd.f32 %v220_v23, %v219_v21 }
  0x48   : > { %v230_v26 = vadd.f32 %v229_v24, %v228_v22  ;;  %p580_p0 = pneg %p579_p11 }
  0x49   : > { %339 = vperm.xlu1 %542, %v285_v7   ;;  %334 = vperm.xlu0 %541, %v284_v8   ;;  %v222_v27 = vrot.slane %v221_v25, 2 }
  0x4a   : > { %v231_v28 = vrot.slane %v230_v26, 2  ;;  %p587_p3 = pnand %p586_p1, %p580_p0 }
  0x4b   : > { %v223_v29 = vadd.f32 %v222_v27, %v221_v25 }
  0x4c   : > { %v232_v30 = vadd.f32 %v231_v28, %v230_v26 }
  0x4d   : > { %v224_v31 = vrot.slane %v223_v29, 1 }
  0x4e   : > { %v233_v32 = vrot.slane %v232_v30, 1 }
  0x4f   : > { %v225_v33 = vadd.f32 %v224_v31, %v223_v29 }
  0x50   : > { %v234_v34 = vadd.f32 %v233_v32, %v232_v30 }
  0x51   : > { %v236_v35 = vmul.f32 0.03125, %v225_v33 }
  0x52   : > { %v237_v36 = vmul.f32 0.03125, %v234_v34 }
  0x53   : > { %v238_v37 = vsub.f32 %v209_v9, %v236_v35  ;;  %v239_v38 = vsub.f32 %v210_v10, %v236_v35  ;;  %v240_v41 = vsub.f32 %v211_v14, %v236_v35  ;;  %v241_v47 = vsub.f32 %v212_v18, %v236_v35 }
  0x54   : > { %v242_v39 = vsub.f32 %v213_v11, %v237_v36  ;;  %v243_v40 = vsub.f32 %v214_v12, %v237_v36  ;;  %v244_v44 = vsub.f32 %v215_v16, %v237_v36  ;;  %v245_v50 = vsub.f32 %v216_v20, %v237_v36 }
  0x55   : > { %v246_v42 = vmul.f32 %v238_v37, %v238_v37  ;;  %v247_v43 = vmul.f32 %v239_v38, %v239_v38  ;;  %v248_v48 = vmul.f32 %v240_v41, %v240_v41  ;;  %v249_v53 = vmul.f32 %v241_v47, %v241_v47 }
  0x56   : > { %v250_v45 = vmul.f32 %v242_v39, %v242_v39  ;;  %v251_v46 = vmul.f32 %v243_v40, %v243_v40  ;;  %v252_v51 = vmul.f32 %v244_v44, %v244_v44  ;;  %v253_v55 = vmul.f32 %v245_v50, %v245_v50 }
  0x57   : > { %v254_v49 = vadd.f32 %v247_v43, %v246_v42 }
  0x58   : > { %v263_v52 = vadd.f32 %v251_v46, %v250_v45 }
  0x59   : > { %v255_v54 = vadd.f32 %v254_v49, %v248_v48 }
  0x5a   : > { %v264_v56 = vadd.f32 %v263_v52, %v252_v51 }
  0x5b   : > { %v256_v57 = vadd.f32 %v255_v54, %v249_v53 }
  0x5c   : > { %v265_v58 = vadd.f32 %v264_v56, %v253_v55 }
  0x5d   : > { %v257_v59 = vrot.slane %v256_v57, 4 }
  0x5e   : > { %v266_v60 = vrot.slane %v265_v58, 4 }
  0x5f   : > { %v258_v61 = vadd.f32 %v257_v59, %v256_v57 }
  0x60   : > { %v267_v62 = vadd.f32 %v266_v60, %v265_v58 }
  0x61   : > { %v259_v63 = vrot.slane %v258_v61, 2 }
  0x62   : > { %v268_v0 = vrot.slane %v267_v62, 2 }
  0x63   : > { %v260_v1 = vadd.f32 %v259_v63, %v258_v61 }
  0x64   : > { %v269_v2 = vadd.f32 %v268_v0, %v267_v62 }
  0x65   : > { %v261_v3 = vrot.slane %v260_v1, 1 }
  0x66   : > { %v270_v4 = vrot.slane %v269_v2, 1 }
  0x67   : > { %v262_v5 = vadd.f32 %v261_v3, %v260_v1 }
  0x68   : > { %v271_v6 = vadd.f32 %v270_v4, %v269_v2 }
  0x69   : > { %v272_v7 = vmul.f32 0.03125, %v262_v5 }
  0x6a   : > { %v273_v8 = vmul.f32 0.03125, %v271_v6 }
  0x6b   : > { %v274_v9 = vadd.f32 1e-06, %v272_v7 }
  0x6c   : > { %v275_v10 = vadd.f32 1e-06, %v273_v8 }
  0x6d   : > { %543 = vrsqrt.f32 %v274_v9 }
  0x6e   : > { %545 = vrsqrt.f32 %v275_v10 }
  0x77   : > { %v544_v11 = vpop.eup %543 }
  0x78   : > { %v546_v12 = vpop.eup %545  ;;  %v286_v15 = vmul.f32 %v544_v11, %v238_v37  ;;  %v287_v17 = vmul.f32 %v544_v11, %v239_v38  ;;  %v288_v21 = vmul.f32 %v544_v11, %v240_v41  ;;  %v289_v23 = vmul.f32 %v544_v11, %v241_v47 }
  0x79   : > { %v290_v16 = vmul.f32 %v546_v12, %v242_v39  ;;  %v291_v18 = vmul.f32 %v546_v12, %v243_v40  ;;  %v292_v22 = vmul.f32 %v546_v12, %v244_v44  ;;  %v293_v24 = vmul.f32 %v546_v12, %v245_v50 }
  0xbc   : > { %v307_v13 = vpop.permute.xlu1 %306  ;;  %v297_v14 = vpop.permute.xlu0 %296 }
  0xbd   : > { %v314_v25 = vmul.f32 %v297_v14, %v286_v15  ;;  %v318_v26 = vmul.f32 %v297_v14, %v290_v16  ;;  %v316_v35 = vmul.f32 %v307_v13, %v288_v21  ;;  %v320_v36 = vmul.f32 %v307_v13, %v292_v22 }
  0xc0   : > { %v312_v19 = vpop.permute.xlu1 %311  ;;  %v302_v20 = vpop.permute.xlu0 %301 }
  0xc1   : > { %v315_v27 = vmul.f32 %v302_v20, %v287_v17  ;;  %v319_v28 = vmul.f32 %v302_v20, %v291_v18  ;;  %v317_v37 = vmul.f32 %v312_v19, %v289_v23  ;;  %v321_v38 = vmul.f32 %v312_v19, %v293_v24 }
  0xc4   : > { %v330_v29 = vpop.permute.xlu1 %329  ;;  %v325_v30 = vpop.permute.xlu0 %324 }
  0xc5   : > { %v343_v31 = vadd.f32 %v330_v29, %v315_v27  ;;  %v347_v32 = vadd.f32 %v330_v29, %v319_v28  ;;  %v342_v33 = vadd.f32 %v325_v30, %v314_v25  ;;  %v346_v34 = vadd.f32 %v325_v30, %v318_v26 }
  0xc7   : > { %351 = vst [vmem:[%s206_s22 + $0x8] sm:$0xff] %v343_v31  ;;  %355 = vst [vmem:[%s206_s22 + $0x28] sm:$0xff] %v347_v32 }
  0xc8   : > { %350 = vst [vmem:[%s206_s22] sm:$0xff] %v342_v33  ;;  %354 = vst [vmem:[%s206_s22 + $0x20] sm:$0xff] %v346_v34  ;;  %v340_v39 = vpop.permute.xlu1 %339  ;;  %v335_v40 = vpop.permute.xlu0 %334 }
  0xc9   : > { %v345_v41 = vadd.f32 %v340_v39, %v317_v37  ;;  %v349_v42 = vadd.f32 %v340_v39, %v321_v38  ;;  %v344_v43 = vadd.f32 %v335_v40, %v316_v35  ;;  %v348_v44 = vadd.f32 %v335_v40, %v320_v36 }
  0xcb   : > { %353 = vst [vmem:[%s206_s22 + $0x18] sm:$0xff] %v345_v41  ;;  %357 = vst [vmem:[%s206_s22 + $0x38] sm:$0xff] %v349_v42 }
  0xcc   : > { %352 = vst [vmem:[%s206_s22 + $0x10] sm:$0xff] %v344_v43  ;;  %356 = vst [vmem:[%s206_s22 + $0x30] sm:$0xff] %v348_v44 }
  0xcd   : > { %590 = shalt.err (!%p587_p3)
}
  0xce   : > { %s591_s5 = scalar_lea.hbm %s852_s15, 1024  ;;  %s595_s21 = scalar_lea.hbm %s904_s3, 2048 }
  0xcf   : > { %p592_p4 = scmp.ne.s32.totalorder %s852_s15, %s591_s5  ;;  %p596_p12 = scmp.lt.u32.totalorder %s852_s15, %s904_s3 }
  0xd0   : > { %p597_p2 = scmp.lt.u32.totalorder %s595_s21, %s591_s5  ;;  %p599_p8 = scmp.lt.u32.totalorder %s591_s5, %s852_s15 }
  0xd1   : > { %p593_p6 = pnand %p592_p4, %p911_p9 }
  0xd2   : > { %p598_p5 = por %p597_p2, %p596_p12 }
  0xd3   : > { %p594_p7 = pneg %p593_p6 }
  0xd4   : > { %p600_p11 = por %p599_p8, %p598_p5 }
  0xd6   : > { %p601_p0 = pnand %p600_p11, %p594_p7 }
  0xd8   : > { %604 = shalt.err (!%p601_p0)
}
  0xd9   : > { %s667_s22 = smov 128   ;;  %s668_s10 = smov 256  }
  0xda   : > { %s669_s19 = smov 8  }
  0xdb   : > { %474 = dma.vmem_to_hbm [thread:$0]  (%p911_p9), %s847_s9, 1024, %s852_s15, %s359_s28, %s667_s22, %s668_s10, %s669_s19  }
  0xdc PF: > { %s389_s23 = sand.u32 1, %s639_s12   ;;  %p912_p10 = scmp.ne.s32.totalorder %s909_s27, 0 }
  0xdd   : > { %p913_p13 = scmp.ge.s32.totalorder %s659_s17, 2  ;;  %s390_s24 = scalar_lea.sflag [#allocation4], %s389_s23 }
  0xdf   : > { %p481_p1 = pnand %p913_p13, %p912_p10 }
  0xe1   : > { %634 = dma.done.wait (!%p481_p1), %s390_s24, 1024  }
  0xe2   : > { %636 = vsyncadd (!%p481_p1), %s390_s24, 4294966272  ;;  %s19_s17 = sadd.s32 1, %s659_s17   ;;  %s914_s12 = smov %s643_s13 }
  0xe3   : > { %p16_p3 = scmp.ge.s32.totalorder %s19_s17, 4   ;;  %s915_s13 = smov %s647_s14 }
  0xe4   : > { %s916_s14 = smov %s746_s26  ;;  %s917_s15 = smov %s655_s16 }
  0xe5   : > { %s918_s16 = smov %s920_s20  ;;  %18 = sbr.rel (!%p16_p3) target bundleno = 6 (0x6), region = 77 }
  0xec   :  { %395 = vsyncpa [#allocation3], 1 }
  0xed   :  { %397 = vsyncpa [#allocation3 + $0x1], 1 }
  0xee   :  { %398 = vsyncpa [#allocation4], 1 }
  0xef   :  { %400 = vsyncpa [#allocation4 + $0x1], 1 }

</bundles_post_ra>
